<compile_context>
chip_gen: v5e
topology: v5e:2x2
jax: 0.10.0
libtpu: 0.0.40
codegen_flags: <defaults>
</compile_context>

<pallas_src>
import functools

import jax
import jax.numpy as jnp
from jax.experimental import pallas as pl
from jax.experimental.pallas import tpu as pltpu


def lstm_kernel(x_ref, wih_ref, whh_ref, b_ref, wfc_ref, bfc_ref, out_ref,
                *, seq_len, batch, hidden):
    """x_ref: (T*Bp, I) bf16 time-major-flattened, batch-padded input.

    wih_ref: (I, 4H) bf16, whh_ref: (H, 4H) bf16, b_ref: (1, 4H) f32,
    wfc_ref: (H, O) f32, bfc_ref: (1, O) f32, out_ref: (Bp, O) f32.
    """
    H = hidden

    # Hoisted input projection for ALL timesteps: single-pass bf16 MXU matmul
    # with f32 accumulation, bias (b_ih + b_hh) folded in.
    gates_x = (jnp.dot(x_ref[...], wih_ref[...],
                       preferred_element_type=jnp.float32)
               + b_ref[...])                                    # (T*Bp, 4H) f32

    h = jnp.zeros((batch, H), jnp.float32)
    c = jnp.zeros((batch, H), jnp.float32)

    # Loop-invariant recurrent weight, loaded from VMEM once.
    whh = whh_ref[...]                                          # (H, 4H) bf16

    # Serial recurrence, fully unrolled at trace time (static slices, vreg state).
    for t in range(seq_len):
        gates = (gates_x[t * batch:(t + 1) * batch, :]
                 + jnp.dot(h.astype(jnp.bfloat16), whh,
                           preferred_element_type=jnp.float32))  # (Bp, 4H) f32

        # One EUP sigmoid pass over the lane-full (Bp, 4H=128) vreg, tanh only
        # where needed. PyTorch gate order: i, f, g, o.
        s = jax.nn.sigmoid(gates)
        g_g = jnp.tanh(gates[:, 2 * H:3 * H])
        i_g = s[:, 0 * H:1 * H]
        f_g = s[:, 1 * H:2 * H]
        o_g = s[:, 3 * H:4 * H]

        c = f_g * c + i_g * g_g
        h = o_g * jnp.tanh(c)

    # Fused fc on the last hidden state (tiny; kept f32).
    out_ref[...] = (jnp.dot(h, wfc_ref[...],
                            preferred_element_type=jnp.float32)
                    + bfc_ref[...]).astype(out_ref.dtype)


def prepare_params(w_ih, w_hh, b_ih, b_hh, w_fc, b_fc):
    """One-time (load-time) layout + dtype preparation of the module weights."""
    return dict(
        wih_t=jnp.transpose(w_ih).astype(jnp.bfloat16),          # (I, 4H)
        whh_t=jnp.transpose(w_hh).astype(jnp.bfloat16),          # (H, 4H)
        bias=(b_ih + b_hh).reshape(1, -1).astype(jnp.float32),   # (1, 4H)
        wfc_t=jnp.transpose(w_fc).astype(jnp.float32),           # (H, O)
        bfc=b_fc.reshape(1, -1).astype(jnp.float32),             # (1, O)
    )


@functools.partial(jax.jit, static_argnames=("hidden_size", "output_size"))
def lstm_model_forward(x, wih_t, whh_t, bias, wfc_t, bfc,
                       *, hidden_size, output_size):
    """x: (B, T, I) float32 (batch_first, matching the PyTorch module)."""
    B, T, I = x.shape
    H, O = hidden_size, output_size
    B_pad = ((B + 7) // 8) * 8   # f32 sublane multiple

    # Time-major, batch-padded to a full sublane, flattened, bf16 for the MXU.
    # Row index = t * B_pad + b; padded rows carry zeros (harmless: each batch
    # row's recurrence is independent) and are sliced off after the call.
    x_tm = jnp.transpose(x, (1, 0, 2))                           # (T, B, I)
    x_tm = jnp.pad(x_tm, ((0, 0), (0, B_pad - B), (0, 0)))       # (T, Bp, I)
    x_tm = x_tm.reshape(T * B_pad, I).astype(jnp.bfloat16)       # (T*Bp, I)

    kernel = functools.partial(lstm_kernel, seq_len=T, batch=B_pad, hidden=H)

    # Single kernel invocation (no grid): total VMEM footprint is a few KiB,
    # far under any generation's limit at these sizes.
    out = pl.pallas_call(
        kernel,
        out_shape=jax.ShapeDtypeStruct((B_pad, O), jnp.float32),
        in_specs=[pl.BlockSpec(memory_space=pltpu.MemorySpace.VMEM)] * 6,
        out_specs=pl.BlockSpec(memory_space=pltpu.MemorySpace.VMEM),
    )(x_tm, wih_t, whh_t, bias, wfc_t, bfc)

    return out[:B]


def reference_forward(x, w_ih, w_hh, b_ih, b_hh, w_fc, b_fc):
    """Pure-JAX f32 reference mirroring PyTorch nn.LSTM + nn.Linear."""
    B, T, I = x.shape
    H = w_hh.shape[1]
    h = jnp.zeros((B, H), jnp.float32)
    c = jnp.zeros((B, H), jnp.float32)
    for t in range(T):
        gates = x[:, t, :] @ w_ih.T + b_ih + h @ w_hh.T + b_hh
        i_g = jax.nn.sigmoid(gates[:, 0 * H:1 * H])
        f_g = jax.nn.sigmoid(gates[:, 1 * H:2 * H])
        g_g = jnp.tanh(gates[:, 2 * H:3 * H])
        o_g = jax.nn.sigmoid(gates[:, 3 * H:4 * H])
        c = f_g * c + i_g * g_g
        h = o_g * jnp.tanh(c)
    return h @ w_fc.T + b_fc


def _xavier_uniform(key, shape):
    fan_out, fan_in = shape
    bound = jnp.sqrt(6.0 / (fan_in + fan_out))
    return jax.random.uniform(key, shape, jnp.float32, -bound, bound)


def _orthogonal(key, shape):
    rows, cols = shape
    a = jax.random.normal(key, (max(rows, cols), min(rows, cols)), jnp.float32)
    q, r = jnp.linalg.qr(a)
    q = q * jnp.sign(jnp.diag(r))[None, :]
    if rows < cols:
        q = q.T
    return q[:rows, :cols]


if __name__ == "__main__":
    # Module hyperparameters (num_layers=1; dropout is a no-op with 1 layer).
    input_size, hidden_size, output_size = 16, 32, 8
    B, T = 4, 8

    key = jax.random.PRNGKey(0)
    k_x, k_ih, k_hh, k_fc = jax.random.split(key, 4)

    # Parameters initialized as in _initialize_weights (xavier / orthogonal / zeros)
    w_ih = _xavier_uniform(k_ih, (4 * hidden_size, input_size))    # weight_ih_l0
    w_hh = _orthogonal(k_hh, (4 * hidden_size, hidden_size))       # weight_hh_l0
    b_ih = jnp.zeros((4 * hidden_size,), jnp.float32)
    b_hh = jnp.zeros((4 * hidden_size,), jnp.float32)
    w_fc = _xavier_uniform(k_fc, (output_size, hidden_size))
    b_fc = jnp.zeros((output_size,), jnp.float32)

    x = jax.random.normal(k_x, (B, T, input_size), jnp.float32)

    # One-time weight layout/dtype prep (outside the per-forward path).
    params = prepare_params(w_ih, w_hh, b_ih, b_hh, w_fc, b_fc)

    out = lstm_model_forward(x, params["wih_t"], params["whh_t"], params["bias"],
                             params["wfc_t"], params["bfc"],
                             hidden_size=hidden_size, output_size=output_size)
    out = jax.block_until_ready(out)

    ref = reference_forward(x, w_ih, w_hh, b_ih, b_hh, w_fc, b_fc)
    assert out.shape == (B, output_size)
    # bf16 MXU operands (vs f32 reference) compound slightly through the
    # 8-step recurrence; 2e-2 is a comfortable bound at these shapes.
    assert jnp.allclose(out, ref, atol=2e-2, rtol=2e-2), "mismatch vs reference"

    print("KERNEL_OK")
</pallas_src>

<mosaic_0001>
module attributes {stable_mosaic.version = 11 : i64} {
  func.func @lstm_kernel(%arg0: memref<64x16xbf16, #tpu.memory_space<vmem>>, %arg1: memref<16x128xbf16, #tpu.memory_space<vmem>>, %arg2: memref<32x128xbf16, #tpu.memory_space<vmem>>, %arg3: memref<1x128xf32, #tpu.memory_space<vmem>>, %arg4: memref<32x8xf32, #tpu.memory_space<vmem>>, %arg5: memref<1x8xf32, #tpu.memory_space<vmem>>, %arg6: memref<8x8xf32, #tpu.memory_space<vmem>>) attributes {dimension_semantics = [], scalar_prefetch = 0 : i64, scratch_operands = 0 : i64, tpu.core_type = #tpu.core_type<tc>} {
    %c0 = arith.constant 0 : index
    %c0_0 = arith.constant 0 : index
    %0 = vector.load %arg0[%c0, %c0_0] : memref<64x16xbf16, #tpu.memory_space<vmem>>, vector<64x16xbf16>
    %c0_1 = arith.constant 0 : index
    %c0_2 = arith.constant 0 : index
    %1 = vector.load %arg1[%c0_1, %c0_2] : memref<16x128xbf16, #tpu.memory_space<vmem>>, vector<16x128xbf16>
    %cst = arith.constant dense<0.000000e+00> : vector<64x128xf32>
    %2 = tpu.matmul %0, %1, %cst {dimension_numbers = #tpu.dot_dimension_numbers<[1], [0], [0], [1], [0, 0, 1, 1], [], []>} : vector<64x16xbf16>, vector<16x128xbf16>, vector<64x128xf32> -> vector<64x128xf32>
    %c0_3 = arith.constant 0 : index
    %c0_4 = arith.constant 0 : index
    %3 = vector.load %arg3[%c0_3, %c0_4] : memref<1x128xf32, #tpu.memory_space<vmem>>, vector<1x128xf32>
    %4 = vector.broadcast %3 : vector<1x128xf32> to vector<64x128xf32>
    %5 = arith.addf %2, %4 : vector<64x128xf32>
    %cst_5 = arith.constant 0.000000e+00 : f32
    %6 = vector.broadcast %cst_5 : f32 to vector<8x32xf32>
    %cst_6 = arith.constant 0.000000e+00 : f32
    %7 = vector.broadcast %cst_6 : f32 to vector<8x32xf32>
    %c0_7 = arith.constant 0 : index
    %c0_8 = arith.constant 0 : index
    %8 = vector.load %arg2[%c0_7, %c0_8] : memref<32x128xbf16, #tpu.memory_space<vmem>>, vector<32x128xbf16>
    %9 = vector.extract_strided_slice %5 {offsets = [0, 0], sizes = [8, 128], strides = [1, 1]} : vector<64x128xf32> to vector<8x128xf32>
    %10 = arith.truncf %6 : vector<8x32xf32> to vector<8x32xbf16>
    %cst_9 = arith.constant dense<0.000000e+00> : vector<8x128xf32>
    %11 = tpu.matmul %10, %8, %cst_9 {dimension_numbers = #tpu.dot_dimension_numbers<[1], [0], [0], [1], [0, 0, 1, 1], [], []>} : vector<8x32xbf16>, vector<32x128xbf16>, vector<8x128xf32> -> vector<8x128xf32>
    %12 = arith.addf %9, %11 : vector<8x128xf32>
    %13 = arith.negf %12 : vector<8x128xf32>
    %14 = math.exp %13 : vector<8x128xf32>
    %cst_10 = arith.constant 1.000000e+00 : f32
    %15 = vector.broadcast %cst_10 : f32 to vector<8x128xf32>
    %16 = arith.addf %15, %14 : vector<8x128xf32>
    %17 = arith.divf %15, %16 : vector<8x128xf32>
    %18 = vector.extract_strided_slice %12 {offsets = [0, 64], sizes = [8, 32], strides = [1, 1]} : vector<8x128xf32> to vector<8x32xf32>
    %19 = math.tanh %18 : vector<8x32xf32>
    %20 = vector.extract_strided_slice %17 {offsets = [0, 0], sizes = [8, 32], strides = [1, 1]} : vector<8x128xf32> to vector<8x32xf32>
    %21 = vector.extract_strided_slice %17 {offsets = [0, 32], sizes = [8, 32], strides = [1, 1]} : vector<8x128xf32> to vector<8x32xf32>
    %22 = vector.extract_strided_slice %17 {offsets = [0, 96], sizes = [8, 32], strides = [1, 1]} : vector<8x128xf32> to vector<8x32xf32>
    %23 = arith.mulf %21, %7 : vector<8x32xf32>
    %24 = arith.mulf %20, %19 : vector<8x32xf32>
    %25 = arith.addf %23, %24 : vector<8x32xf32>
    %26 = math.tanh %25 : vector<8x32xf32>
    %27 = arith.mulf %22, %26 : vector<8x32xf32>
    %28 = vector.extract_strided_slice %5 {offsets = [8, 0], sizes = [8, 128], strides = [1, 1]} : vector<64x128xf32> to vector<8x128xf32>
    %29 = arith.truncf %27 : vector<8x32xf32> to vector<8x32xbf16>
    %cst_11 = arith.constant dense<0.000000e+00> : vector<8x128xf32>
    %30 = tpu.matmul %29, %8, %cst_11 {dimension_numbers = #tpu.dot_dimension_numbers<[1], [0], [0], [1], [0, 0, 1, 1], [], []>} : vector<8x32xbf16>, vector<32x128xbf16>, vector<8x128xf32> -> vector<8x128xf32>
    %31 = arith.addf %28, %30 : vector<8x128xf32>
    %32 = arith.negf %31 : vector<8x128xf32>
    %33 = math.exp %32 : vector<8x128xf32>
    %cst_12 = arith.constant 1.000000e+00 : f32
    %34 = vector.broadcast %cst_12 : f32 to vector<8x128xf32>
    %35 = arith.addf %34, %33 : vector<8x128xf32>
    %36 = arith.divf %34, %35 : vector<8x128xf32>
    %37 = vector.extract_strided_slice %31 {offsets = [0, 64], sizes = [8, 32], strides = [1, 1]} : vector<8x128xf32> to vector<8x32xf32>
    %38 = math.tanh %37 : vector<8x32xf32>
    %39 = vector.extract_strided_slice %36 {offsets = [0, 0], sizes = [8, 32], strides = [1, 1]} : vector<8x128xf32> to vector<8x32xf32>
    %40 = vector.extract_strided_slice %36 {offsets = [0, 32], sizes = [8, 32], strides = [1, 1]} : vector<8x128xf32> to vector<8x32xf32>
    %41 = vector.extract_strided_slice %36 {offsets = [0, 96], sizes = [8, 32], strides = [1, 1]} : vector<8x128xf32> to vector<8x32xf32>
    %42 = arith.mulf %40, %25 : vector<8x32xf32>
    %43 = arith.mulf %39, %38 : vector<8x32xf32>
    %44 = arith.addf %42, %43 : vector<8x32xf32>
    %45 = math.tanh %44 : vector<8x32xf32>
    %46 = arith.mulf %41, %45 : vector<8x32xf32>
    %47 = vector.extract_strided_slice %5 {offsets = [16, 0], sizes = [8, 128], strides = [1, 1]} : vector<64x128xf32> to vector<8x128xf32>
    %48 = arith.truncf %46 : vector<8x32xf32> to vector<8x32xbf16>
    %cst_13 = arith.constant dense<0.000000e+00> : vector<8x128xf32>
    %49 = tpu.matmul %48, %8, %cst_13 {dimension_numbers = #tpu.dot_dimension_numbers<[1], [0], [0], [1], [0, 0, 1, 1], [], []>} : vector<8x32xbf16>, vector<32x128xbf16>, vector<8x128xf32> -> vector<8x128xf32>
    %50 = arith.addf %47, %49 : vector<8x128xf32>
    %51 = arith.negf %50 : vector<8x128xf32>
    %52 = math.exp %51 : vector<8x128xf32>
    %cst_14 = arith.constant 1.000000e+00 : f32
    %53 = vector.broadcast %cst_14 : f32 to vector<8x128xf32>
    %54 = arith.addf %53, %52 : vector<8x128xf32>
    %55 = arith.divf %53, %54 : vector<8x128xf32>
    %56 = vector.extract_strided_slice %50 {offsets = [0, 64], sizes = [8, 32], strides = [1, 1]} : vector<8x128xf32> to vector<8x32xf32>
    %57 = math.tanh %56 : vector<8x32xf32>
    %58 = vector.extract_strided_slice %55 {offsets = [0, 0], sizes = [8, 32], strides = [1, 1]} : vector<8x128xf32> to vector<8x32xf32>
    %59 = vector.extract_strided_slice %55 {offsets = [0, 32], sizes = [8, 32], strides = [1, 1]} : vector<8x128xf32> to vector<8x32xf32>
    %60 = vector.extract_strided_slice %55 {offsets = [0, 96], sizes = [8, 32], strides = [1, 1]} : vector<8x128xf32> to vector<8x32xf32>
    %61 = arith.mulf %59, %44 : vector<8x32xf32>
    %62 = arith.mulf %58, %57 : vector<8x32xf32>
    %63 = arith.addf %61, %62 : vector<8x32xf32>
    %64 = math.tanh %63 : vector<8x32xf32>
    %65 = arith.mulf %60, %64 : vector<8x32xf32>
    %66 = vector.extract_strided_slice %5 {offsets = [24, 0], sizes = [8, 128], strides = [1, 1]} : vector<64x128xf32> to vector<8x128xf32>
    %67 = arith.truncf %65 : vector<8x32xf32> to vector<8x32xbf16>
    %cst_15 = arith.constant dense<0.000000e+00> : vector<8x128xf32>
    %68 = tpu.matmul %67, %8, %cst_15 {dimension_numbers = #tpu.dot_dimension_numbers<[1], [0], [0], [1], [0, 0, 1, 1], [], []>} : vector<8x32xbf16>, vector<32x128xbf16>, vector<8x128xf32> -> vector<8x128xf32>
    %69 = arith.addf %66, %68 : vector<8x128xf32>
    %70 = arith.negf %69 : vector<8x128xf32>
    %71 = math.exp %70 : vector<8x128xf32>
    %cst_16 = arith.constant 1.000000e+00 : f32
    %72 = vector.broadcast %cst_16 : f32 to vector<8x128xf32>
    %73 = arith.addf %72, %71 : vector<8x128xf32>
    %74 = arith.divf %72, %73 : vector<8x128xf32>
    %75 = vector.extract_strided_slice %69 {offsets = [0, 64], sizes = [8, 32], strides = [1, 1]} : vector<8x128xf32> to vector<8x32xf32>
    %76 = math.tanh %75 : vector<8x32xf32>
    %77 = vector.extract_strided_slice %74 {offsets = [0, 0], sizes = [8, 32], strides = [1, 1]} : vector<8x128xf32> to vector<8x32xf32>
    %78 = vector.extract_strided_slice %74 {offsets = [0, 32], sizes = [8, 32], strides = [1, 1]} : vector<8x128xf32> to vector<8x32xf32>
    %79 = vector.extract_strided_slice %74 {offsets = [0, 96], sizes = [8, 32], strides = [1, 1]} : vector<8x128xf32> to vector<8x32xf32>
    %80 = arith.mulf %78, %63 : vector<8x32xf32>
    %81 = arith.mulf %77, %76 : vector<8x32xf32>
    %82 = arith.addf %80, %81 : vector<8x32xf32>
    %83 = math.tanh %82 : vector<8x32xf32>
    %84 = arith.mulf %79, %83 : vector<8x32xf32>
    %85 = vector.extract_strided_slice %5 {offsets = [32, 0], sizes = [8, 128], strides = [1, 1]} : vector<64x128xf32> to vector<8x128xf32>
    %86 = arith.truncf %84 : vector<8x32xf32> to vector<8x32xbf16>
    %cst_17 = arith.constant dense<0.000000e+00> : vector<8x128xf32>
    %87 = tpu.matmul %86, %8, %cst_17 {dimension_numbers = #tpu.dot_dimension_numbers<[1], [0], [0], [1], [0, 0, 1, 1], [], []>} : vector<8x32xbf16>, vector<32x128xbf16>, vector<8x128xf32> -> vector<8x128xf32>
    %88 = arith.addf %85, %87 : vector<8x128xf32>
    %89 = arith.negf %88 : vector<8x128xf32>
    %90 = math.exp %89 : vector<8x128xf32>
    %cst_18 = arith.constant 1.000000e+00 : f32
    %91 = vector.broadcast %cst_18 : f32 to vector<8x128xf32>
    %92 = arith.addf %91, %90 : vector<8x128xf32>
    %93 = arith.divf %91, %92 : vector<8x128xf32>
    %94 = vector.extract_strided_slice %88 {offsets = [0, 64], sizes = [8, 32], strides = [1, 1]} : vector<8x128xf32> to vector<8x32xf32>
    %95 = math.tanh %94 : vector<8x32xf32>
    %96 = vector.extract_strided_slice %93 {offsets = [0, 0], sizes = [8, 32], strides = [1, 1]} : vector<8x128xf32> to vector<8x32xf32>
    %97 = vector.extract_strided_slice %93 {offsets = [0, 32], sizes = [8, 32], strides = [1, 1]} : vector<8x128xf32> to vector<8x32xf32>
    %98 = vector.extract_strided_slice %93 {offsets = [0, 96], sizes = [8, 32], strides = [1, 1]} : vector<8x128xf32> to vector<8x32xf32>
    %99 = arith.mulf %97, %82 : vector<8x32xf32>
    %100 = arith.mulf %96, %95 : vector<8x32xf32>
    %101 = arith.addf %99, %100 : vector<8x32xf32>
    %102 = math.tanh %101 : vector<8x32xf32>
    %103 = arith.mulf %98, %102 : vector<8x32xf32>
    %104 = vector.extract_strided_slice %5 {offsets = [40, 0], sizes = [8, 128], strides = [1, 1]} : vector<64x128xf32> to vector<8x128xf32>
    %105 = arith.truncf %103 : vector<8x32xf32> to vector<8x32xbf16>
    %cst_19 = arith.constant dense<0.000000e+00> : vector<8x128xf32>
    %106 = tpu.matmul %105, %8, %cst_19 {dimension_numbers = #tpu.dot_dimension_numbers<[1], [0], [0], [1], [0, 0, 1, 1], [], []>} : vector<8x32xbf16>, vector<32x128xbf16>, vector<8x128xf32> -> vector<8x128xf32>
    %107 = arith.addf %104, %106 : vector<8x128xf32>
    %108 = arith.negf %107 : vector<8x128xf32>
    %109 = math.exp %108 : vector<8x128xf32>
    %cst_20 = arith.constant 1.000000e+00 : f32
    %110 = vector.broadcast %cst_20 : f32 to vector<8x128xf32>
    %111 = arith.addf %110, %109 : vector<8x128xf32>
    %112 = arith.divf %110, %111 : vector<8x128xf32>
    %113 = vector.extract_strided_slice %107 {offsets = [0, 64], sizes = [8, 32], strides = [1, 1]} : vector<8x128xf32> to vector<8x32xf32>
    %114 = math.tanh %113 : vector<8x32xf32>
    %115 = vector.extract_strided_slice %112 {offsets = [0, 0], sizes = [8, 32], strides = [1, 1]} : vector<8x128xf32> to vector<8x32xf32>
    %116 = vector.extract_strided_slice %112 {offsets = [0, 32], sizes = [8, 32], strides = [1, 1]} : vector<8x128xf32> to vector<8x32xf32>
    %117 = vector.extract_strided_slice %112 {offsets = [0, 96], sizes = [8, 32], strides = [1, 1]} : vector<8x128xf32> to vector<8x32xf32>
    %118 = arith.mulf %116, %101 : vector<8x32xf32>
    %119 = arith.mulf %115, %114 : vector<8x32xf32>
    %120 = arith.addf %118, %119 : vector<8x32xf32>
    %121 = math.tanh %120 : vector<8x32xf32>
    %122 = arith.mulf %117, %121 : vector<8x32xf32>
    %123 = vector.extract_strided_slice %5 {offsets = [48, 0], sizes = [8, 128], strides = [1, 1]} : vector<64x128xf32> to vector<8x128xf32>
    %124 = arith.truncf %122 : vector<8x32xf32> to vector<8x32xbf16>
    %cst_21 = arith.constant dense<0.000000e+00> : vector<8x128xf32>
    %125 = tpu.matmul %124, %8, %cst_21 {dimension_numbers = #tpu.dot_dimension_numbers<[1], [0], [0], [1], [0, 0, 1, 1], [], []>} : vector<8x32xbf16>, vector<32x128xbf16>, vector<8x128xf32> -> vector<8x128xf32>
    %126 = arith.addf %123, %125 : vector<8x128xf32>
    %127 = arith.negf %126 : vector<8x128xf32>
    %128 = math.exp %127 : vector<8x128xf32>
    %cst_22 = arith.constant 1.000000e+00 : f32
    %129 = vector.broadcast %cst_22 : f32 to vector<8x128xf32>
    %130 = arith.addf %129, %128 : vector<8x128xf32>
    %131 = arith.divf %129, %130 : vector<8x128xf32>
    %132 = vector.extract_strided_slice %126 {offsets = [0, 64], sizes = [8, 32], strides = [1, 1]} : vector<8x128xf32> to vector<8x32xf32>
    %133 = math.tanh %132 : vector<8x32xf32>
    %134 = vector.extract_strided_slice %131 {offsets = [0, 0], sizes = [8, 32], strides = [1, 1]} : vector<8x128xf32> to vector<8x32xf32>
    %135 = vector.extract_strided_slice %131 {offsets = [0, 32], sizes = [8, 32], strides = [1, 1]} : vector<8x128xf32> to vector<8x32xf32>
    %136 = vector.extract_strided_slice %131 {offsets = [0, 96], sizes = [8, 32], strides = [1, 1]} : vector<8x128xf32> to vector<8x32xf32>
    %137 = arith.mulf %135, %120 : vector<8x32xf32>
    %138 = arith.mulf %134, %133 : vector<8x32xf32>
    %139 = arith.addf %137, %138 : vector<8x32xf32>
    %140 = math.tanh %139 : vector<8x32xf32>
    %141 = arith.mulf %136, %140 : vector<8x32xf32>
    %142 = vector.extract_strided_slice %5 {offsets = [56, 0], sizes = [8, 128], strides = [1, 1]} : vector<64x128xf32> to vector<8x128xf32>
    %143 = arith.truncf %141 : vector<8x32xf32> to vector<8x32xbf16>
    %cst_23 = arith.constant dense<0.000000e+00> : vector<8x128xf32>
    %144 = tpu.matmul %143, %8, %cst_23 {dimension_numbers = #tpu.dot_dimension_numbers<[1], [0], [0], [1], [0, 0, 1, 1], [], []>} : vector<8x32xbf16>, vector<32x128xbf16>, vector<8x128xf32> -> vector<8x128xf32>
    %145 = arith.addf %142, %144 : vector<8x128xf32>
    %146 = arith.negf %145 : vector<8x128xf32>
    %147 = math.exp %146 : vector<8x128xf32>
    %cst_24 = arith.constant 1.000000e+00 : f32
    %148 = vector.broadcast %cst_24 : f32 to vector<8x128xf32>
    %149 = arith.addf %148, %147 : vector<8x128xf32>
    %150 = arith.divf %148, %149 : vector<8x128xf32>
    %151 = vector.extract_strided_slice %145 {offsets = [0, 64], sizes = [8, 32], strides = [1, 1]} : vector<8x128xf32> to vector<8x32xf32>
    %152 = math.tanh %151 : vector<8x32xf32>
    %153 = vector.extract_strided_slice %150 {offsets = [0, 0], sizes = [8, 32], strides = [1, 1]} : vector<8x128xf32> to vector<8x32xf32>
    %154 = vector.extract_strided_slice %150 {offsets = [0, 32], sizes = [8, 32], strides = [1, 1]} : vector<8x128xf32> to vector<8x32xf32>
    %155 = vector.extract_strided_slice %150 {offsets = [0, 96], sizes = [8, 32], strides = [1, 1]} : vector<8x128xf32> to vector<8x32xf32>
    %156 = arith.mulf %154, %139 : vector<8x32xf32>
    %157 = arith.mulf %153, %152 : vector<8x32xf32>
    %158 = arith.addf %156, %157 : vector<8x32xf32>
    %159 = math.tanh %158 : vector<8x32xf32>
    %160 = arith.mulf %155, %159 : vector<8x32xf32>
    %c0_25 = arith.constant 0 : index
    %c0_26 = arith.constant 0 : index
    %161 = vector.load %arg4[%c0_25, %c0_26] : memref<32x8xf32, #tpu.memory_space<vmem>>, vector<32x8xf32>
    %cst_27 = arith.constant dense<0.000000e+00> : vector<8x8xf32>
    %162 = tpu.matmul %160, %161, %cst_27 {dimension_numbers = #tpu.dot_dimension_numbers<[1], [0], [0], [1], [0, 0, 1, 1], [], []>} : vector<8x32xf32>, vector<32x8xf32>, vector<8x8xf32> -> vector<8x8xf32>
    %c0_28 = arith.constant 0 : index
    %c0_29 = arith.constant 0 : index
    %163 = vector.load %arg5[%c0_28, %c0_29] : memref<1x8xf32, #tpu.memory_space<vmem>>, vector<1x8xf32>
    %164 = vector.broadcast %163 : vector<1x8xf32> to vector<8x8xf32>
    %165 = arith.addf %162, %164 : vector<8x8xf32>
    %c0_30 = arith.constant 0 : index
    %c0_31 = arith.constant 0 : index
    %166 = vector.load %arg6[%c0_30, %c0_31] : memref<8x8xf32, #tpu.memory_space<vmem>>, vector<8x8xf32>
    tpu.vector_store %arg6[%c0_30, %c0_31], %165 {strides = array<i32>} : memref<8x8xf32, #tpu.memory_space<vmem>>, vector<8x8xf32>,
    return
  }
}

</mosaic_0001>

<bundles_post_ra>
// kernel: lstm_model_forward.1
= control target key start
LH: loop header
LB: loop body
LE: loop exit
PB: predicated region body
PF: predicated region fallthrough
CT: control target
= control target key end

     0   :  { %vm64_vm0 = vcmask 130048   ;;  %v746_v4 = vmov 0   ;;  %s747_s29 = smov 64   ;;  %vm122_vm5 = vcmask 261120   ;;  %s900_s1 = inlined_call_operand.vmem [shape: bf16[16,128], index: 1, kind: input, shape index: {}]   ;;  %s901_s2 = inlined_call_operand.vmem [shape: bf16[32,128], index: 2, kind: input, shape index: {}]   ;;  %s902_s0 = inlined_call_operand.vmem [shape: bf16[64,16], index: 0, kind: input, shape index: {}]   ;;  %s903_s3 = inlined_call_operand.vmem [shape: f32[1,128], index: 3, kind: input, shape index: {}]   ;;  %s904_s4 = inlined_call_operand.vmem [shape: f32[32,8], index: 4, kind: input, shape index: {}]   ;;  %s905_s5 = inlined_call_operand.vmem [shape: f32[1,8], index: 5, kind: input, shape index: {}]   ;;  %s906_s6 = inlined_call_operand.vmem [shape: f32[8,8], index: 6, kind: output, shape index: {}]  }
   0x1   :  { %v674_v0 = vld [vmem:[%s900_s1] sm:$0xff]  ;;  %v790_v1 = vld [vmem:[%s901_s2 + $0x8] sm:$0xff] }
   0x2   :  { %v670_v2 = vld [vmem:[%s902_s0] sm:$0xff]  ;;  %84 = vmatpush.bf16.msra.mxu0 %v674_v0  ;;  %132 = vmatpush.bf16.msra.mxu1 %v790_v1  ;;  %v671_v60 = vld [vmem:[%s902_s0 + $0x8] sm:$0xff] }
   0x3   :  { %v799_v3 = vld [vmem:[%s901_s2] sm:$0xff]  ;;  %190 = vmatpush.bf16.msra.mxu2 %v790_v1  ;;  %248 = vmatpush.bf16.msra.mxu3 %v790_v1 }
   0x4   :  { %v818_v5 = vld [vmem:[%s903_s3] ss:$0 sm:$0xff]  ;;  %s748_s3 = smov 32  }
   0x5   :  { %642 = vmatmul.msk.bf16.vlgmr.msra.gmra.mxu0 %vm64_vm0, %v670_v2 }
   0x6   :  { %133 = vmatpush.bf16.msra.mxu1 %v799_v3 }
   0x7   :  { %191 = vmatpush.bf16.msra.mxu2 %v799_v3  ;;  %249 = vmatpush.bf16.msra.mxu3 %v799_v3 }
   0x9   :  { %134 = vmatmul.bf16.vlgmr.msra.gmra.mxu1 %v746_v4 }
   0xa   :  { %306 = vmatpush.bf16.msrb.mxu1 %v790_v1 }
   0xb   :  { %364 = vmatpush.bf16.msrb.mxu2 %v790_v1  ;;  %422 = vmatpush.bf16.msrb.mxu3 %v790_v1 }
   0xe   :  { %307 = vmatpush.bf16.msrb.mxu1 %v799_v3 }
   0xf   :  { %365 = vmatpush.bf16.msrb.mxu2 %v799_v3  ;;  %423 = vmatpush.bf16.msrb.mxu3 %v799_v3 }
  0x12   :  { %480 = vmatpush.bf16.msra.mxu1 %v790_v1 }
  0x15   :  { %643 = vmatmul.msk.bf16.gmra.mxu0 %vm64_vm0, %v671_v60 }
  0x16   :  { %481 = vmatpush.bf16.msra.mxu1 %v799_v3 }
  0x82   :  { %v86_v6 = vpop.f32.mrf.mxu0 }
  0x83   :  { %v87_v7 = vadd.f32 %v818_v5, %v86_v6 }
  0x86   :  { %v135_v8 = vpop.f32.mrf.mxu1 }
  0x87   :  { %v139_v9 = vadd.f32 %v135_v8, %v87_v7 }
  0x89   :  { %682 = vtanh.f32 %v139_v9  ;;  %v654_v12 = vmul.f32 -1.442695, %v139_v9 }
  0x8a   :  { %v88_v35 = vpop.f32.mrf.mxu0 }
  0x8b   :  { %684 = vpow2.f32 %v654_v12  ;;  %v89_v36 = vadd.f32 %v818_v5, %v88_v35 }
  0x8e   :  { %v137_v10 = vpop.f32.mrf.mxu1 }
  0x8f   :  { %v683_v11 = vpop.eup %682 }
  0x90   :  { %162 = vrot.lane.b32.xlu0 %v683_v11, %s747_s29 }
  0x91   :  { %v685_v13 = vpop.eup %684 }
  0x92   :  { %v143_v14 = vadd.f32 1.0, %v685_v13 }
  0x94   :  { %686 = vrcp.f32 %v143_v14  ;;  %v155_v20 = vand.u32 2147483648, %v143_v14  ;;  %vm149_vm2 = vweird.f32 %v143_v14  ;;  %v153_v21 = vand.u32 2147483647, %v143_v14 }
  0x96   :  { %v156_v23 = vor.u32 1.1754944e-38, %v155_v20  ;;  %vm154_vm4 = vcmp.eq.f32.partialorder %v153_v21, 8.507059e+37 }
  0x9a   :  { %v687_v15 = vpop.eup %686 }
  0x9b   :  { %v145_v16 = vmul.f32 %v687_v15, %v143_v14  ;;  %vm150_vm1 = vweird.f32 %v687_v15 }
  0x9c   :  { %vm151_vm3 = vmor %vm149_vm2, %vm150_vm1 }
  0x9d   :  { %v146_v17 = vsub.f32 1.0, %v145_v16 }
  0x9f   :  { %v147_v18 = vmul.f32 %v687_v15, %v146_v17 }
  0xa1   :  { %v148_v19 = vadd.f32 %v687_v15, %v147_v18 }
  0xa3   :  { %v152_v22 = vsel %vm151_vm3, %v687_v15, %v148_v19 }
  0xa4   :  { %v157_v25 = vsel %vm154_vm4, %v156_v23, %v152_v22 }
  0xa5   :  { %v160_v27 = vmul.f32 0.0, %v157_v25 }
 0x102   :  { %v163_v24 = vpop.permute.xlu0 %162 }
 0x103   :  { %v165_v26 = vmul.f32 %v163_v24, %v157_v25 }
 0x105   :  { %167 = vrot.lane.b32.xlu0 %v165_v26, %s748_s3 }
 0x177   :  { %v168_v28 = vpop.permute.xlu0 %167 }
 0x178   :  { %v170_v29 = vadd.f32 %v168_v28, %v160_v27 }
 0x17a   :  { %688 = vtanh.f32 %v170_v29 }
 0x180   :  { %v689_v30 = vpop.eup %688 }
 0x181   :  { %173 = vrot.lane.b32.xlu1 %v689_v30, %s747_s29 }
 0x1f3   :  { %v174_v31 = vpop.permute.xlu1 %173 }
 0x1f4   :  { %v176_v32 = vmul.f32 %v174_v31, %v157_v25 }
 0x1f6   :  { %v177_v33 = vpack.c.bf16 %v176_v32, %v176_v32 }
 0x1f8   :  { %179 = vrot.lane.b32.xlu1 %v177_v33, %s748_s3 }
 0x26a   :  { %v180_v34 = vpop.permute.xlu1 %179 }
 0x26b   :  { %655 = vmatmul.msk.bf16.vlgmr.msra.gmra.mxu2 %vm122_vm5, %v180_v34 }
 0x26c   :  { %538 = vmatpush.bf16.msra.mxu2 %v790_v1  ;;  %v91_v1 = vpop.f32.mrf.mxu0 }
 0x26d   :  { %v92_v2 = vadd.f32 %v818_v5, %v91_v1 }
 0x270   :  { %539 = vmatpush.bf16.msra.mxu2 %v799_v3 }
 0x274   :  { %v93_v31 = vpop.f32.mrf.mxu0 }
 0x275   :  { %v94_v32 = vadd.f32 %v818_v5, %v93_v31 }
 0x2ee   :  { %v193_v37 = vpop.f32.mrf.mxu2 }
 0x2ef   :  { %v197_v38 = vadd.f32 %v193_v37, %v89_v36 }
 0x2f1   :  { %690 = vtanh.f32 %v197_v38  ;;  %v656_v41 = vmul.f32 -1.442695, %v197_v38 }
 0x2f3   :  { %692 = vpow2.f32 %v656_v41 }
 0x2f6   :  { %v195_v39 = vpop.f32.mrf.mxu2 }
 0x2f7   :  { %v691_v40 = vpop.eup %690 }
 0x2f8   :  { %220 = vrot.lane.b32.xlu2 %v691_v40, %s747_s29 }
 0x2f9   :  { %v693_v42 = vpop.eup %692 }
 0x2fa   :  { %v201_v43 = vadd.f32 1.0, %v693_v42 }
 0x2fc   :  { %694 = vrcp.f32 %v201_v43  ;;  %v213_v49 = vand.u32 2147483648, %v201_v43  ;;  %vm207_vm7 = vweird.f32 %v201_v43  ;;  %v211_v50 = vand.u32 2147483647, %v201_v43 }
 0x2fe   :  { %v214_v52 = vor.u32 1.1754944e-38, %v213_v49  ;;  %vm212_vm9 = vcmp.eq.f32.partialorder %v211_v50, 8.507059e+37 }
 0x302   :  { %v695_v44 = vpop.eup %694 }
 0x303   :  { %v203_v45 = vmul.f32 %v695_v44, %v201_v43  ;;  %vm208_vm6 = vweird.f32 %v695_v44 }
 0x304   :  { %vm209_vm8 = vmor %vm207_vm7, %vm208_vm6 }
 0x305   :  { %v204_v46 = vsub.f32 1.0, %v203_v45 }
 0x307   :  { %v205_v47 = vmul.f32 %v695_v44, %v204_v46 }
 0x309   :  { %v206_v48 = vadd.f32 %v695_v44, %v205_v47 }
 0x30b   :  { %v210_v51 = vsel %vm209_vm8, %v695_v44, %v206_v48 }
 0x30c   :  { %v215_v54 = vsel %vm212_vm9, %v214_v52, %v210_v51 }
 0x30d   :  { %v218_v56 = vmul.f32 %v215_v54, %v170_v29 }
 0x352   :  { %v221_v53 = vpop.permute.xlu2 %220 }
 0x353   :  { %v223_v55 = vmul.f32 %v221_v53, %v215_v54 }
 0x355   :  { %225 = vrot.lane.b32.xlu2 %v223_v55, %s748_s3 }
 0x3af   :  { %v226_v57 = vpop.permute.xlu2 %225 }
 0x3b0   :  { %v228_v58 = vadd.f32 %v226_v57, %v218_v56  ;;  %v672_v56 = vld [vmem:[%s902_s0 + $0x10] sm:$0xff] }
 0x3b1   :  { %644 = vmatmul.msk.bf16.gmra.mxu0 %vm64_vm0, %v672_v56 }
 0x3b2   :  { %696 = vtanh.f32 %v228_v58 }
 0x3b8   :  { %v697_v59 = vpop.eup %696 }
 0x3b9   :  { %231 = vrot.lane.b32.xlu0 %v697_v59, %s747_s29 }
 0x42b   :  { %v232_v61 = vpop.permute.xlu0 %231 }
 0x42c   :  { %v234_v62 = vmul.f32 %v232_v61, %v215_v54 }
 0x42e   :  { %v235_v63 = vpack.c.bf16 %v234_v62, %v234_v62  ;;  %v96_v61 = vpop.f32.mrf.mxu0 }
 0x42f   :  { %v97_v62 = vadd.f32 %v818_v5, %v96_v61 }
 0x430   :  { %237 = vrot.lane.b32.xlu1 %v235_v63, %s748_s3 }
 0x4a2   :  { %v238_v0 = vpop.permute.xlu1 %237 }
 0x4a3   :  { %657 = vmatmul.msk.bf16.vlgmr.msra.gmra.mxu3 %vm122_vm5, %v238_v0 }
 0x526   :  { %v251_v3 = vpop.f32.mrf.mxu3 }
 0x527   :  { %v255_v4 = vadd.f32 %v251_v3, %v92_v2 }
 0x529   :  { %698 = vtanh.f32 %v255_v4  ;;  %v658_v8 = vmul.f32 -1.442695, %v255_v4 }
 0x52b   :  { %700 = vpow2.f32 %v658_v8 }
 0x52e   :  { %v253_v6 = vpop.f32.mrf.mxu3 }
 0x52f   :  { %v699_v7 = vpop.eup %698 }
 0x530   :  { %278 = vrot.lane.b32.xlu2 %v699_v7, %s747_s29 }
 0x531   :  { %v701_v9 = vpop.eup %700 }
 0x532   :  { %v259_v10 = vadd.f32 1.0, %v701_v9 }
 0x534   :  { %702 = vrcp.f32 %v259_v10  ;;  %v271_v16 = vand.u32 2147483648, %v259_v10  ;;  %vm265_vm11 = vweird.f32 %v259_v10  ;;  %v269_v17 = vand.u32 2147483647, %v259_v10 }
 0x536   :  { %v272_v19 = vor.u32 1.1754944e-38, %v271_v16  ;;  %vm270_vm13 = vcmp.eq.f32.partialorder %v269_v17, 8.507059e+37 }
 0x53a   :  { %v703_v11 = vpop.eup %702 }
 0x53b   :  { %v261_v12 = vmul.f32 %v703_v11, %v259_v10  ;;  %vm266_vm10 = vweird.f32 %v703_v11 }
 0x53c   :  { %vm267_vm12 = vmor %vm265_vm11, %vm266_vm10 }
 0x53d   :  { %v262_v13 = vsub.f32 1.0, %v261_v12 }
 0x53f   :  { %v263_v14 = vmul.f32 %v703_v11, %v262_v13 }
 0x541   :  { %v264_v15 = vadd.f32 %v703_v11, %v263_v14 }
 0x543   :  { %v268_v18 = vsel %vm267_vm12, %v703_v11, %v264_v15 }
 0x544   :  { %v273_v21 = vsel %vm270_vm13, %v272_v19, %v268_v18 }
 0x545   :  { %v276_v23 = vmul.f32 %v273_v21, %v228_v58 }
 0x58a   :  { %v279_v20 = vpop.permute.xlu2 %278 }
 0x58b   :  { %v281_v22 = vmul.f32 %v279_v20, %v273_v21 }
 0x58d   :  { %283 = vrot.lane.b32.xlu0 %v281_v22, %s748_s3 }
 0x5ff   :  { %v284_v24 = vpop.permute.xlu0 %283 }
 0x600   :  { %v286_v25 = vadd.f32 %v284_v24, %v276_v23 }
 0x602   :  { %704 = vtanh.f32 %v286_v25 }
 0x608   :  { %v705_v26 = vpop.eup %704 }
 0x609   :  { %289 = vrot.lane.b32.xlu1 %v705_v26, %s747_s29 }
 0x67b   :  { %v290_v27 = vpop.permute.xlu1 %289 }
 0x67c   :  { %v292_v28 = vmul.f32 %v290_v27, %v273_v21  ;;  %v98_v27 = vpop.f32.mrf.mxu0 }
 0x67e   :  { %v293_v29 = vpack.c.bf16 %v292_v28, %v292_v28  ;;  %v99_v28 = vadd.f32 %v818_v5, %v98_v27 }
 0x680   :  { %295 = vrot.lane.b32.xlu2 %v293_v29, %s748_s3 }
 0x6da   :  { %v296_v30 = vpop.permute.xlu2 %295 }
 0x6db   :  { %659 = vmatmul.msk.bf16.vlgmr.msrb.gmra.mxu1 %vm122_vm5, %v296_v30 }
 0x758   :  { %v309_v33 = vpop.f32.mrf.mxu1 }
 0x759   :  { %v313_v34 = vadd.f32 %v309_v33, %v94_v32 }
 0x75b   :  { %706 = vtanh.f32 %v313_v34  ;;  %v660_v37 = vmul.f32 -1.442695, %v313_v34 }
 0x75d   :  { %708 = vpow2.f32 %v660_v37 }
 0x760   :  { %v311_v35 = vpop.f32.mrf.mxu1 }
 0x761   :  { %v707_v36 = vpop.eup %706 }
 0x762   :  { %336 = vrot.lane.b32.xlu0 %v707_v36, %s747_s29 }
 0x763   :  { %v709_v38 = vpop.eup %708 }
 0x764   :  { %v317_v39 = vadd.f32 1.0, %v709_v38 }
 0x766   :  { %710 = vrcp.f32 %v317_v39  ;;  %v329_v45 = vand.u32 2147483648, %v317_v39  ;;  %vm323_vm15 = vweird.f32 %v317_v39  ;;  %v327_v46 = vand.u32 2147483647, %v317_v39 }
 0x768   :  { %v330_v48 = vor.u32 1.1754944e-38, %v329_v45  ;;  %vm328_vm2 = vcmp.eq.f32.partialorder %v327_v46, 8.507059e+37 }
 0x76c   :  { %v711_v40 = vpop.eup %710 }
 0x76d   :  { %v319_v41 = vmul.f32 %v711_v40, %v317_v39  ;;  %vm324_vm14 = vweird.f32 %v711_v40 }
 0x76e   :  { %vm325_vm1 = vmor %vm323_vm15, %vm324_vm14 }
 0x76f   :  { %v320_v42 = vsub.f32 1.0, %v319_v41 }
 0x771   :  { %v321_v43 = vmul.f32 %v711_v40, %v320_v42 }
 0x773   :  { %v322_v44 = vadd.f32 %v711_v40, %v321_v43 }
 0x775   :  { %v326_v47 = vsel %vm325_vm1, %v711_v40, %v322_v44 }
 0x776   :  { %v331_v50 = vsel %vm328_vm2, %v330_v48, %v326_v47 }
 0x777   :  { %v334_v52 = vmul.f32 %v331_v50, %v286_v25 }
 0x7d4   :  { %v337_v49 = vpop.permute.xlu0 %336 }
 0x7d5   :  { %v339_v51 = vmul.f32 %v337_v49, %v331_v50 }
 0x7d7   :  { %341 = vrot.lane.b32.xlu1 %v339_v51, %s748_s3 }
 0x849   :  { %v342_v53 = vpop.permute.xlu1 %341 }
 0x84a   :  { %v344_v54 = vadd.f32 %v342_v53, %v334_v52  ;;  %v673_v52 = vld [vmem:[%s902_s0 + $0x18] sm:$0xff] }
 0x84b   :  { %645 = vmatmul.msk.bf16.gmra.mxu0 %vm64_vm0, %v673_v52 }
 0x84c   :  { %712 = vtanh.f32 %v344_v54 }
 0x852   :  { %v713_v55 = vpop.eup %712 }
 0x853   :  { %347 = vrot.lane.b32.xlu2 %v713_v55, %s747_s29 }
 0x8ad   :  { %v348_v57 = vpop.permute.xlu2 %347 }
 0x8ae   :  { %v350_v58 = vmul.f32 %v348_v57, %v331_v50 }
 0x8b0   :  { %v351_v59 = vpack.c.bf16 %v350_v58, %v350_v58 }
 0x8b2   :  { %353 = vrot.lane.b32.xlu0 %v351_v59, %s748_s3 }
 0x8c8   :  { %v101_v57 = vpop.f32.mrf.mxu0 }
 0x8c9   :  { %v102_v58 = vadd.f32 %v818_v5, %v101_v57 }
 0x924   :  { %v354_v60 = vpop.permute.xlu0 %353 }
 0x925   :  { %661 = vmatmul.msk.bf16.vlgmr.msrb.gmra.mxu2 %vm122_vm5, %v354_v60 }
 0x9a8   :  { %v367_v63 = vpop.f32.mrf.mxu2 }
 0x9a9   :  { %v371_v0 = vadd.f32 %v367_v63, %v97_v62 }
 0x9ab   :  { %714 = vtanh.f32 %v371_v0  ;;  %v662_v3 = vmul.f32 -1.442695, %v371_v0 }
 0x9ad   :  { %716 = vpow2.f32 %v662_v3 }
 0x9b0   :  { %v369_v1 = vpop.f32.mrf.mxu2 }
 0x9b1   :  { %v715_v2 = vpop.eup %714 }
 0x9b2   :  { %394 = vrot.lane.b32.xlu1 %v715_v2, %s747_s29 }
 0x9b3   :  { %v717_v4 = vpop.eup %716 }
 0x9b4   :  { %v375_v6 = vadd.f32 1.0, %v717_v4 }
 0x9b6   :  { %718 = vrcp.f32 %v375_v6  ;;  %v387_v12 = vand.u32 2147483648, %v375_v6  ;;  %vm381_vm4 = vweird.f32 %v375_v6  ;;  %v385_v13 = vand.u32 2147483647, %v375_v6 }
 0x9b8   :  { %v388_v15 = vor.u32 1.1754944e-38, %v387_v12  ;;  %vm386_vm7 = vcmp.eq.f32.partialorder %v385_v13, 8.507059e+37 }
 0x9bc   :  { %v719_v7 = vpop.eup %718 }
 0x9bd   :  { %v377_v8 = vmul.f32 %v719_v7, %v375_v6  ;;  %vm382_vm3 = vweird.f32 %v719_v7 }
 0x9be   :  { %vm383_vm6 = vmor %vm381_vm4, %vm382_vm3  ;;  %vm616_vm4 = vcmask 64512  }
 0x9bf   :  { %v378_v9 = vsub.f32 1.0, %v377_v8 }
 0x9c1   :  { %v379_v10 = vmul.f32 %v719_v7, %v378_v9 }
 0x9c3   :  { %v380_v11 = vadd.f32 %v719_v7, %v379_v10 }
 0x9c5   :  { %v384_v14 = vsel %vm383_vm6, %v719_v7, %v380_v11 }
 0x9c6   :  { %v389_v17 = vsel %vm386_vm7, %v388_v15, %v384_v14 }
 0x9c7   :  { %v392_v19 = vmul.f32 %v389_v17, %v344_v54 }
 0xa24   :  { %v395_v16 = vpop.permute.xlu1 %394 }
 0xa25   :  { %v397_v18 = vmul.f32 %v395_v16, %v389_v17 }
 0xa27   :  { %399 = vrot.lane.b32.xlu2 %v397_v18, %s748_s3 }
 0xa81   :  { %v400_v20 = vpop.permute.xlu2 %399 }
 0xa82   :  { %v402_v21 = vadd.f32 %v400_v20, %v392_v19 }
 0xa84   :  { %720 = vtanh.f32 %v402_v21 }
 0xa8a   :  { %v721_v22 = vpop.eup %720 }
 0xa8b   :  { %405 = vrot.lane.b32.xlu0 %v721_v22, %s747_s29 }
 0xafd   :  { %v406_v23 = vpop.permute.xlu0 %405 }
 0xafe   :  { %v408_v24 = vmul.f32 %v406_v23, %v389_v17  ;;  %v103_v23 = vpop.f32.mrf.mxu0 }
 0xb00   :  { %v409_v25 = vpack.c.bf16 %v408_v24, %v408_v24  ;;  %v104_v24 = vadd.f32 %v818_v5, %v103_v23 }
 0xb02   :  { %411 = vrot.lane.b32.xlu1 %v409_v25, %s748_s3 }
 0xb74   :  { %v412_v26 = vpop.permute.xlu1 %411 }
 0xb75   :  { %663 = vmatmul.msk.bf16.vlgmr.msrb.gmra.mxu3 %vm122_vm5, %v412_v26 }
 0xbf8   :  { %v425_v29 = vpop.f32.mrf.mxu3 }
 0xbf9   :  { %v429_v30 = vadd.f32 %v425_v29, %v99_v28 }
 0xbfb   :  { %722 = vtanh.f32 %v429_v30  ;;  %v664_v33 = vmul.f32 -1.442695, %v429_v30 }
 0xbfd   :  { %724 = vpow2.f32 %v664_v33 }
 0xc00   :  { %v427_v31 = vpop.f32.mrf.mxu3 }
 0xc01   :  { %v723_v32 = vpop.eup %722 }
 0xc02   :  { %452 = vrot.lane.b32.xlu2 %v723_v32, %s747_s29 }
 0xc03   :  { %v725_v34 = vpop.eup %724 }
 0xc04   :  { %v433_v35 = vadd.f32 1.0, %v725_v34 }
 0xc06   :  { %726 = vrcp.f32 %v433_v35  ;;  %v445_v41 = vand.u32 2147483648, %v433_v35  ;;  %vm439_vm9 = vweird.f32 %v433_v35  ;;  %v443_v42 = vand.u32 2147483647, %v433_v35 }
 0xc08   :  { %v446_v44 = vor.u32 1.1754944e-38, %v445_v41  ;;  %vm444_vm11 = vcmp.eq.f32.partialorder %v443_v42, 8.507059e+37 }
 0xc0c   :  { %v727_v36 = vpop.eup %726 }
 0xc0d   :  { %v435_v37 = vmul.f32 %v727_v36, %v433_v35  ;;  %vm440_vm8 = vweird.f32 %v727_v36 }
 0xc0e   :  { %vm441_vm10 = vmor %vm439_vm9, %vm440_vm8 }
 0xc0f   :  { %v436_v38 = vsub.f32 1.0, %v435_v37 }
 0xc11   :  { %v437_v39 = vmul.f32 %v727_v36, %v436_v38 }
 0xc13   :  { %v438_v40 = vadd.f32 %v727_v36, %v437_v39 }
 0xc15   :  { %v442_v43 = vsel %vm441_vm10, %v727_v36, %v438_v40 }
 0xc16   :  { %v447_v46 = vsel %vm444_vm11, %v446_v44, %v442_v43 }
 0xc17   :  { %v450_v48 = vmul.f32 %v447_v46, %v402_v21 }
 0xc5c   :  { %v453_v45 = vpop.permute.xlu2 %452 }
 0xc5d   :  { %v455_v47 = vmul.f32 %v453_v45, %v447_v46 }
 0xc5f   :  { %457 = vrot.lane.b32.xlu0 %v455_v47, %s748_s3  ;;  %v586_v47 = vld [vmem:[%s904_s4 + $0x18] sm:$0xff] }
 0xc60   :  { %608 = vmatpush.msra.mxu3 %v586_v47 }
 0xcd1   :  { %v458_v49 = vpop.permute.xlu0 %457 }
 0xcd2   :  { %v460_v50 = vadd.f32 %v458_v49, %v450_v48  ;;  %v585_v48 = vld [vmem:[%s904_s4 + $0x10] sm:$0xff]  ;;  %v584_v49 = vld [vmem:[%s904_s4 + $0x8] sm:$0xff] }
 0xcd3   :  { %609 = vmatpush.msra.mxu3 %v585_v48 }
 0xcd4   :  { %728 = vtanh.f32 %v460_v50 }
 0xcd5   :  { %610 = vmatpush.msra.mxu3 %v584_v49 }
 0xcda   :  { %v729_v51 = vpop.eup %728 }
 0xcdb   :  { %463 = vrot.lane.b32.xlu1 %v729_v51, %s747_s29 }
 0xd4d   :  { %v464_v53 = vpop.permute.xlu1 %463 }
 0xd4e   :  { %v466_v54 = vmul.f32 %v464_v53, %v447_v46 }
 0xd50   :  { %v467_v55 = vpack.c.bf16 %v466_v54, %v466_v54  ;;  %v681_v54 = vld [vmem:[%s905_s5] ss:$0 sm:$0xff] }
 0xd52   :  { %469 = vrot.lane.b32.xlu2 %v467_v55, %s748_s3 }
 0xdac   :  { %v470_v56 = vpop.permute.xlu2 %469 }
 0xdad   :  { %665 = vmatmul.msk.bf16.vlgmr.msra.gmra.mxu1 %vm122_vm5, %v470_v56 }
 0xe2a   :  { %v483_v59 = vpop.f32.mrf.mxu1 }
 0xe2b   :  { %v487_v60 = vadd.f32 %v483_v59, %v102_v58 }
 0xe2d   :  { %730 = vtanh.f32 %v487_v60  ;;  %v666_v63 = vmul.f32 -1.442695, %v487_v60 }
 0xe2f   :  { %732 = vpow2.f32 %v666_v63 }
 0xe32   :  { %v485_v61 = vpop.f32.mrf.mxu1 }
 0xe33   :  { %v731_v62 = vpop.eup %730 }
 0xe34   :  { %510 = vrot.lane.b32.xlu0 %v731_v62, %s747_s29 }
 0xe35   :  { %v733_v0 = vpop.eup %732 }
 0xe36   :  { %v491_v1 = vadd.f32 1.0, %v733_v0 }
 0xe38   :  { %734 = vrcp.f32 %v491_v1  ;;  %v503_v8 = vand.u32 2147483648, %v491_v1  ;;  %vm497_vm12 = vweird.f32 %v491_v1  ;;  %v501_v9 = vand.u32 2147483647, %v491_v1 }
 0xe3a   :  { %v504_v11 = vor.u32 1.1754944e-38, %v503_v8  ;;  %vm502_vm14 = vcmp.eq.f32.partialorder %v501_v9, 8.507059e+37 }
 0xe3e   :  { %v735_v2 = vpop.eup %734 }
 0xe3f   :  { %v493_v3 = vmul.f32 %v735_v2, %v491_v1  ;;  %vm498_vm0 = vweird.f32 %v735_v2 }
 0xe40   :  { %vm499_vm13 = vmor %vm497_vm12, %vm498_vm0 }
 0xe41   :  { %v494_v4 = vsub.f32 1.0, %v493_v3 }
 0xe43   :  { %v495_v6 = vmul.f32 %v735_v2, %v494_v4 }
 0xe45   :  { %v496_v7 = vadd.f32 %v735_v2, %v495_v6 }
 0xe47   :  { %v500_v10 = vsel %vm499_vm13, %v735_v2, %v496_v7 }
 0xe48   :  { %v505_v13 = vsel %vm502_vm14, %v504_v11, %v500_v10 }
 0xe49   :  { %v508_v15 = vmul.f32 %v505_v13, %v460_v50  ;;  %v583_v50 = vld [vmem:[%s904_s4] sm:$0xff] }
 0xe4a   :  { %611 = vmatpush.msra.mxu3 %v583_v50 }
 0xea6   :  { %v511_v12 = vpop.permute.xlu0 %510 }
 0xea7   :  { %v513_v14 = vmul.f32 %v511_v12, %v505_v13 }
 0xea9   :  { %515 = vrot.lane.b32.xlu1 %v513_v14, %s748_s3 }
 0xf1b   :  { %v516_v16 = vpop.permute.xlu1 %515 }
 0xf1c   :  { %v518_v17 = vadd.f32 %v516_v16, %v508_v15 }
 0xf1e   :  { %736 = vtanh.f32 %v518_v17 }
 0xf24   :  { %v737_v18 = vpop.eup %736 }
 0xf25   :  { %521 = vrot.lane.b32.xlu2 %v737_v18, %s747_s29 }
 0xf7f   :  { %v522_v19 = vpop.permute.xlu2 %521 }
 0xf80   :  { %v524_v20 = vmul.f32 %v522_v19, %v505_v13 }
 0xf82   :  { %v525_v21 = vpack.c.bf16 %v524_v20, %v524_v20 }
 0xf84   :  { %527 = vrot.lane.b32.xlu0 %v525_v21, %s748_s3 }
 0xff6   :  { %v528_v22 = vpop.permute.xlu0 %527 }
 0xff7   :  { %667 = vmatmul.msk.bf16.vlgmr.msra.gmra.mxu2 %vm122_vm5, %v528_v22 }
0x107a   :  { %v541_v25 = vpop.f32.mrf.mxu2 }
0x107b   :  { %v545_v26 = vadd.f32 %v541_v25, %v104_v24 }
0x107d   :  { %738 = vtanh.f32 %v545_v26  ;;  %v668_v29 = vmul.f32 -1.442695, %v545_v26 }
0x107f   :  { %740 = vpow2.f32 %v668_v29 }
0x1082   :  { %v543_v27 = vpop.f32.mrf.mxu2 }
0x1083   :  { %v739_v28 = vpop.eup %738 }
0x1084   :  { %568 = vrot.lane.b32.xlu1 %v739_v28, %s747_s29 }
0x1085   :  { %v741_v30 = vpop.eup %740 }
0x1086   :  { %v549_v31 = vadd.f32 1.0, %v741_v30 }
0x1088   :  { %742 = vrcp.f32 %v549_v31  ;;  %v561_v37 = vand.u32 2147483648, %v549_v31  ;;  %vm555_vm1 = vweird.f32 %v549_v31  ;;  %v559_v5 = vand.u32 2147483647, %v549_v31 }
0x108a   :  { %v562_v39 = vor.u32 1.1754944e-38, %v561_v37  ;;  %vm560_vm3 = vcmp.eq.f32.partialorder %v559_v5, 8.507059e+37 }
0x108e   :  { %v743_v32 = vpop.eup %742 }
0x108f   :  { %v551_v33 = vmul.f32 %v743_v32, %v549_v31  ;;  %vm556_vm15 = vweird.f32 %v743_v32 }
0x1090   :  { %vm557_vm2 = vmor %vm555_vm1, %vm556_vm15 }
0x1091   :  { %v552_v34 = vsub.f32 1.0, %v551_v33 }
0x1093   :  { %v553_v35 = vmul.f32 %v743_v32, %v552_v34 }
0x1095   :  { %v554_v36 = vadd.f32 %v743_v32, %v553_v35 }
0x1097   :  { %v558_v38 = vsel %vm557_vm2, %v743_v32, %v554_v36 }
0x1098   :  { %v563_v41 = vsel %vm560_vm3, %v562_v39, %v558_v38 }
0x1099   :  { %v566_v43 = vmul.f32 %v563_v41, %v518_v17 }
0x10f6   :  { %v569_v40 = vpop.permute.xlu1 %568 }
0x10f7   :  { %v571_v42 = vmul.f32 %v569_v40, %v563_v41 }
0x10f9   :  { %573 = vrot.lane.b32.xlu2 %v571_v42, %s748_s3 }
0x1153   :  { %v574_v44 = vpop.permute.xlu2 %573 }
0x1154   :  { %v576_v45 = vadd.f32 %v574_v44, %v566_v43 }
0x1156   :  { %744 = vtanh.f32 %v576_v45 }
0x115c   :  { %v745_v46 = vpop.eup %744 }
0x115d   :  { %579 = vrot.lane.b32.xlu0 %v745_v46, %s747_s29 }
0x11cf   :  { %v580_v51 = vpop.permute.xlu0 %579 }
0x11d0   :  { %v582_v52 = vmul.f32 %v580_v51, %v563_v41 }
0x11d2   :  { %592 = vrot.lane.b32.xlu1 %v582_v52, %s748_s3 }
0x1244   :  { %v593_v53 = vpop.permute.xlu1 %592 }
0x1245   :  { %669 = vmatmul.msk.f32.vlgmr.msra.gmra.mxu3 %vm122_vm5, %v593_v53 }
0x12c8   :  { %v613_v55 = vpop.f32.mrf.mxu3 }
0x12c9   :  { %v614_v56 = vadd.f32 %v681_v54, %v613_v55 }
0x12cb   :  { %617 = vst.msk [vmem:[%s906_s6] sm:$0xff] %vm616_vm4, %v614_v56 }

</bundles_post_ra>
